<compile_context>
chip_gen: v7x
topology: tpu7x:2x2x1
jax: 0.10.0
libtpu: 0.0.40
codegen_flags: <defaults>
</compile_context>

<pallas_src>
import functools
import math

import jax
import jax.numpy as jnp
from jax.experimental import pallas as pl
from jax.experimental.pallas import tpu as pltpu

_INV_SQRT2 = 1.0 / math.sqrt(2.0)


def _round_up(v, m):
    return ((v + m - 1) // m) * m


def _vmem_capacity_bytes():
    try:
        return int(pltpu.get_tpu_info().vmem_capacity_bytes)
    except Exception:
        return 64 << 20  # conservative fallback: v7x per-TensorCore VMEM


def _make_spec(block_shape, index_map, buffers=None):
    """BlockSpec with optional explicit buffer count (falls back if unsupported)."""
    if buffers is not None and hasattr(pl, "Buffered"):
        try:
            return pl.BlockSpec(block_shape, index_map,
                                pipeline_mode=pl.Buffered(buffers))
        except TypeError:
            pass
    return pl.BlockSpec(block_shape, index_map)


def _mlp_kernel(x_ref, w1_ref, b1_ref, w2_ref, b2_ref, o_ref, *, approx_gelu):
    # x: (bn, IN) f32/bf16, w1: (IN, H) bf16, b1: (1, H) f32 (BN folded),
    # w2: (H, OUT) bf16, b2: (1, OUT) f32, o: (bn, OUT).
    x = x_ref[...].astype(jnp.bfloat16)

    # fc1 + folded BatchNorm1d (bf16 operands, f32 accumulation on the MXU)
    h = jnp.dot(x, w1_ref[...], preferred_element_type=jnp.float32)
    h = h + b1_ref[...]

    if approx_gelu:
        # tanh-approx GELU: transcendental goes to the (otherwise idle) EUP slot
        # instead of a long VPU erf polynomial. Opt-in; not bit-identical to
        # nn.GELU()'s exact erf default.
        h = jax.nn.gelu(h, approximate=True)
    else:
        # Exact erf-based GELU (matches nn.GELU() default).
        h = 0.5 * h * (1.0 + jax.lax.erf(h * _INV_SQRT2))

    # (dropout = identity in eval mode)

    # fc2 (bf16 operands, f32 accumulation)
    out = jnp.dot(h.astype(jnp.bfloat16), w2_ref[...],
                  preferred_element_type=jnp.float32)
    out = out + b2_ref[...]
    o_ref[...] = out.astype(o_ref.dtype)


def prepare_mlp_params(w1, b1, bn_gamma, bn_beta, bn_mean, bn_var, w2, b2,
                       eps=1e-5):
    """Fold BN into fc1 and pad/cast weights ONCE; cache result across calls."""
    in_f, hid = w1.shape
    out_f = w2.shape[1]

    scale = bn_gamma / jnp.sqrt(bn_var + eps)                 # (H,)
    w1_f = (w1 * scale[None, :]).astype(jnp.bfloat16)         # (IN, H)
    b1_f = (b1 * scale + bn_beta - bn_mean * scale).astype(jnp.float32)
    w2_b = w2.astype(jnp.bfloat16)

    in_pad = _round_up(in_f, 128)
    hid_pad = _round_up(hid, 128)
    out_pad = _round_up(out_f, 128)

    w1_p = jnp.zeros((in_pad, hid_pad), jnp.bfloat16).at[:in_f, :hid].set(w1_f)
    b1_p = jnp.zeros((1, hid_pad), jnp.float32).at[0, :hid].set(b1_f)
    w2_p = jnp.zeros((hid_pad, out_pad), jnp.bfloat16).at[:hid, :out_f].set(w2_b)
    b2_p = jnp.zeros((1, out_pad), jnp.float32).at[0, :out_f].set(
        b2.astype(jnp.float32))

    dims = dict(in_f=in_f, hid=hid, out_f=out_f,
                in_pad=in_pad, hid_pad=hid_pad, out_pad=out_pad)
    return (w1_p, b1_p, w2_p, b2_p), dims


def mlp_forward(x, prepared, dims, *, out_dtype=None, approx_gelu=False):
    """Fused eval-mode MLP forward. x: (N, in_features)."""
    w1_p, b1_p, w2_p, b2_p = prepared
    n, in_f = x.shape
    assert in_f == dims["in_f"], "x feature dim mismatch with prepared params"
    in_pad, hid_pad, out_pad = dims["in_pad"], dims["hid_pad"], dims["out_pad"]
    out_f = dims["out_f"]
    out_dtype = out_dtype or x.dtype
    out_isize = jnp.dtype(out_dtype).itemsize
    x_isize = jnp.dtype(x.dtype).itemsize

    # ---- VMEM budget (generation-aware) ----
    vmem_cap = _vmem_capacity_bytes()
    usable = max(vmem_cap - (8 << 20), 16 << 20)
    # single-buffered resident weights + biases
    weight_bytes = ((in_pad * hid_pad + hid_pad * out_pad) * 2
                    + (hid_pad + out_pad) * 4)

    def per_step_bytes(bn):
        return (3 * bn * in_pad * x_isize         # x tiles (<=3 buffers)
                + 2 * bn * out_pad * out_isize    # output tiles (double-buffered)
                + bn * hid_pad * (4 + 2))         # f32 h + its bf16 copy for fc2

    # ---- block_n selection: minimal padding waste, prefer >=2 grid steps ----
    if n <= 256:
        candidates = [_round_up(max(n, 8), 8)]
    else:
        candidates = [128, 256, 512]
        if vmem_cap >= (96 << 20):
            candidates.append(1024)   # v5e/v6e: exploit 128 MiB VMEM
    best = None
    for bn in candidates:
        n_pad_c = _round_up(n, bn)
        waste = n_pad_c - n
        steps_c = n_pad_c // bn
        fits = weight_bytes + per_step_bytes(bn) <= usable
        key = (0 if fits else 1, waste, 0 if steps_c >= 2 else 1, -bn)
        if best is None or key < best[0]:
            best = (key, bn)
    block_n = best[1]
    n_pad = _round_up(n, block_n)
    steps = n_pad // block_n

    # ---- x: skip HBM repack when already aligned (cast happens in-kernel) ----
    if n_pad == n and in_pad == in_f:
        x_in = x
    else:
        x_in = jnp.zeros((n_pad, in_pad), jnp.bfloat16).at[:n, :in_f].set(
            x.astype(jnp.bfloat16))

    vmem_est = weight_bytes + per_step_bytes(block_n) + (4 << 20)
    vmem_limit = int(min(max(vmem_est, 16 << 20), usable))

    # Small feature dims => streaming-bound: deepen the x pipeline.
    x_buffers = 3 if (steps >= 3 and (in_pad + hid_pad + out_pad) <= 1024) else None

    kernel = functools.partial(_mlp_kernel, approx_gelu=approx_gelu)
    out_shape = jax.ShapeDtypeStruct((n_pad, out_pad), out_dtype)

    def build(use_pipeline_modes):
        if use_pipeline_modes:
            in_specs = [
                _make_spec((block_n, in_pad), lambda i: (i, 0), x_buffers),  # x tile
                _make_spec((in_pad, hid_pad), lambda i: (0, 0), 1),   # w1 resident
                _make_spec((1, hid_pad), lambda i: (0, 0), 1),        # b1 (BN folded)
                _make_spec((hid_pad, out_pad), lambda i: (0, 0), 1),  # w2 resident
                _make_spec((1, out_pad), lambda i: (0, 0), 1),        # b2
            ]
        else:
            in_specs = [
                pl.BlockSpec((block_n, in_pad), lambda i: (i, 0)),
                pl.BlockSpec((in_pad, hid_pad), lambda i: (0, 0)),
                pl.BlockSpec((1, hid_pad), lambda i: (0, 0)),
                pl.BlockSpec((hid_pad, out_pad), lambda i: (0, 0)),
                pl.BlockSpec((1, out_pad), lambda i: (0, 0)),
            ]
        return pl.pallas_call(
            kernel,
            out_shape=out_shape,
            grid_spec=pltpu.PrefetchScalarGridSpec(
                num_scalar_prefetch=0,
                grid=(steps,),
                in_specs=in_specs,
                out_specs=pl.BlockSpec((block_n, out_pad), lambda i: (i, 0)),
            ),
            compiler_params=pltpu.CompilerParams(
                dimension_semantics=("parallel",),
                vmem_limit_bytes=vmem_limit,
            ),
        )

    try:
        out_p = build(True)(x_in, w1_p, b1_p, w2_p, b2_p)
    except Exception:
        # Fallback: plain double-buffered specs if pipeline_mode is unsupported.
        out_p = build(False)(x_in, w1_p, b1_p, w2_p, b2_p)

    return out_p[:n, :out_f]


def _init_params(key, in_features, hidden_features, out_features):
    """Deterministic init mimicking nn.Linear defaults (uniform +-1/sqrt(fan_in))."""
    k1, k2, k3, k4 = jax.random.split(key, 4)
    lim1 = 1.0 / math.sqrt(in_features)
    lim2 = 1.0 / math.sqrt(hidden_features)
    w1 = jax.random.uniform(k1, (in_features, hidden_features), jnp.float32,
                            -lim1, lim1)
    b1 = jax.random.uniform(k2, (hidden_features,), jnp.float32, -lim1, lim1)
    w2 = jax.random.uniform(k3, (hidden_features, out_features), jnp.float32,
                            -lim2, lim2)
    b2 = jax.random.uniform(k4, (out_features,), jnp.float32, -lim2, lim2)
    # BatchNorm1d init: gamma=1, beta=0, running_mean=0, running_var=1
    bn_gamma = jnp.ones((hidden_features,), jnp.float32)
    bn_beta = jnp.zeros((hidden_features,), jnp.float32)
    bn_mean = jnp.zeros((hidden_features,), jnp.float32)
    bn_var = jnp.ones((hidden_features,), jnp.float32)
    return w1, b1, bn_gamma, bn_beta, bn_mean, bn_var, w2, b2


if __name__ == "__main__":
    key = jax.random.PRNGKey(0)
    kx, kp = jax.random.split(key)

    N, IN_F, HID, OUT_F = 8, 32, 64, 32
    x = jax.random.normal(kx, (N, IN_F), jnp.float32)
    params = _init_params(kp, IN_F, HID, OUT_F)

    # Fold/pad once (hoisted out of the per-call path), then run the kernel.
    prepared, dims = prepare_mlp_params(*params)
    out = mlp_forward(x, prepared, dims)
    jax.block_until_ready(out)

    w1, b1, g, b, m, v, w2, b2 = params
    eps = 1e-5

    # Reference 1: bf16-operand / f32-accumulate path (matches kernel dtypes).
    scale = g / jnp.sqrt(v + eps)
    w1_f = (w1 * scale[None, :]).astype(jnp.bfloat16)
    b1_f = b1 * scale + b - m * scale
    hb = jnp.dot(x.astype(jnp.bfloat16), w1_f,
                 preferred_element_type=jnp.float32) + b1_f
    hb = 0.5 * hb * (1.0 + jax.lax.erf(hb * _INV_SQRT2))
    ref_bf16 = jnp.dot(hb.astype(jnp.bfloat16), w2.astype(jnp.bfloat16),
                       preferred_element_type=jnp.float32) + b2
    assert jnp.allclose(out, ref_bf16, atol=2e-3, rtol=2e-3), "bf16-ref mismatch"

    # Reference 2: full-f32 eval-mode PyTorch semantics (loose tolerance for
    # bf16 operand rounding).
    h = x @ w1 + b1
    h = (h - m) / jnp.sqrt(v + eps) * g + b
    h = 0.5 * h * (1.0 + jax.lax.erf(h * _INV_SQRT2))
    ref_f32 = h @ w2 + b2
    assert jnp.allclose(out, ref_f32, atol=1e-1, rtol=1e-1), "f32-ref mismatch"

    print("KERNEL_OK")
</pallas_src>

<mosaic_0001>
module attributes {stable_mosaic.version = 11 : i64} {
  func.func @_mlp_kernel(%arg0: i32, %arg1: memref<8x128xbf16, #tpu.memory_space<vmem>>, %arg2: memref<128x128xbf16, #tpu.memory_space<vmem>>, %arg3: memref<1x128xf32, #tpu.memory_space<vmem>>, %arg4: memref<128x128xbf16, #tpu.memory_space<vmem>>, %arg5: memref<1x128xf32, #tpu.memory_space<vmem>>, %arg6: memref<8x128xf32, #tpu.memory_space<vmem>>) attributes {dimension_semantics = [#tpu.dimension_semantics<parallel>], iteration_bounds = array<i64: 1>, scalar_prefetch = 0 : i64, scratch_operands = 0 : i64, tpu.core_type = #tpu.core_type<tc>, window_params = [{transform_indices = @transform_0, window_bounds = array<i64: 8, 128>}, {pipeline_mode = #tpu.pipeline_mode<synchronous>, transform_indices = @transform_1, window_bounds = array<i64: 128, 128>}, {pipeline_mode = #tpu.pipeline_mode<synchronous>, transform_indices = @transform_2, window_bounds = array<i64: 1, 128>}, {pipeline_mode = #tpu.pipeline_mode<synchronous>, transform_indices = @transform_3, window_bounds = array<i64: 128, 128>}, {pipeline_mode = #tpu.pipeline_mode<synchronous>, transform_indices = @transform_4, window_bounds = array<i64: 1, 128>}, {transform_indices = @transform_5, window_bounds = array<i64: 8, 128>}]} {
    %c0 = arith.constant 0 : index
    %c0_0 = arith.constant 0 : index
    %0 = vector.load %arg1[%c0, %c0_0] : memref<8x128xbf16, #tpu.memory_space<vmem>>, vector<8x128xbf16>
    %c0_1 = arith.constant 0 : index
    %c0_2 = arith.constant 0 : index
    %1 = vector.load %arg2[%c0_1, %c0_2] : memref<128x128xbf16, #tpu.memory_space<vmem>>, vector<128x128xbf16>
    %cst = arith.constant dense<0.000000e+00> : vector<8x128xf32>
    %2 = tpu.matmul %0, %1, %cst {dimension_numbers = #tpu.dot_dimension_numbers<[1], [0], [0], [1], [0, 0, 1, 1], [], []>} : vector<8x128xbf16>, vector<128x128xbf16>, vector<8x128xf32> -> vector<8x128xf32>
    %c0_3 = arith.constant 0 : index
    %c0_4 = arith.constant 0 : index
    %3 = vector.load %arg3[%c0_3, %c0_4] : memref<1x128xf32, #tpu.memory_space<vmem>>, vector<1x128xf32>
    %4 = vector.broadcast %3 : vector<1x128xf32> to vector<8x128xf32>
    %5 = arith.addf %2, %4 : vector<8x128xf32>
    %cst_5 = arith.constant 5.000000e-01 : f32
    %6 = vector.broadcast %cst_5 : f32 to vector<8x128xf32>
    %7 = arith.mulf %6, %5 : vector<8x128xf32>
    %cst_6 = arith.constant 0.707106769 : f32
    %8 = vector.broadcast %cst_6 : f32 to vector<8x128xf32>
    %9 = arith.mulf %5, %8 : vector<8x128xf32>
    %10 = math.erf %9 : vector<8x128xf32>
    %cst_7 = arith.constant 1.000000e+00 : f32
    %11 = vector.broadcast %cst_7 : f32 to vector<8x128xf32>
    %12 = arith.addf %11, %10 : vector<8x128xf32>
    %13 = arith.mulf %7, %12 : vector<8x128xf32>
    %14 = arith.truncf %13 : vector<8x128xf32> to vector<8x128xbf16>
    %c0_8 = arith.constant 0 : index
    %c0_9 = arith.constant 0 : index
    %15 = vector.load %arg4[%c0_8, %c0_9] : memref<128x128xbf16, #tpu.memory_space<vmem>>, vector<128x128xbf16>
    %cst_10 = arith.constant dense<0.000000e+00> : vector<8x128xf32>
    %16 = tpu.matmul %14, %15, %cst_10 {dimension_numbers = #tpu.dot_dimension_numbers<[1], [0], [0], [1], [0, 0, 1, 1], [], []>} : vector<8x128xbf16>, vector<128x128xbf16>, vector<8x128xf32> -> vector<8x128xf32>
    %c0_11 = arith.constant 0 : index
    %c0_12 = arith.constant 0 : index
    %17 = vector.load %arg5[%c0_11, %c0_12] : memref<1x128xf32, #tpu.memory_space<vmem>>, vector<1x128xf32>
    %18 = vector.broadcast %17 : vector<1x128xf32> to vector<8x128xf32>
    %19 = arith.addf %16, %18 : vector<8x128xf32>
    %c0_13 = arith.constant 0 : index
    %c0_14 = arith.constant 0 : index
    %20 = vector.load %arg6[%c0_13, %c0_14] : memref<8x128xf32, #tpu.memory_space<vmem>>, vector<8x128xf32>
    tpu.vector_store %arg6[%c0_13, %c0_14], %19 {strides = array<i32>} : memref<8x128xf32, #tpu.memory_space<vmem>>, vector<8x128xf32>,
    return
  }
  func.func @transform_0(%arg0: i32) -> (i32, i32) {
    %c0_i32 = arith.constant 0 : i32
    %c0_i32_0 = arith.constant 0 : i32
    return %arg0, %c0_i32 : i32, i32
  }
  func.func @transform_1(%arg0: i32) -> (i32, i32) {
    %c0_i32 = arith.constant 0 : i32
    %c0_i32_0 = arith.constant 0 : i32
    %c0_i32_1 = arith.constant 0 : i32
    return %c0_i32, %c0_i32_0 : i32, i32
  }
  func.func @transform_2(%arg0: i32) -> (i32, i32) {
    %c0_i32 = arith.constant 0 : i32
    %c0_i32_0 = arith.constant 0 : i32
    %c0_i32_1 = arith.constant 0 : i32
    return %c0_i32, %c0_i32_0 : i32, i32
  }
  func.func @transform_3(%arg0: i32) -> (i32, i32) {
    %c0_i32 = arith.constant 0 : i32
    %c0_i32_0 = arith.constant 0 : i32
    %c0_i32_1 = arith.constant 0 : i32
    return %c0_i32, %c0_i32_0 : i32, i32
  }
  func.func @transform_4(%arg0: i32) -> (i32, i32) {
    %c0_i32 = arith.constant 0 : i32
    %c0_i32_0 = arith.constant 0 : i32
    %c0_i32_1 = arith.constant 0 : i32
    return %c0_i32, %c0_i32_0 : i32, i32
  }
  func.func @transform_5(%arg0: i32) -> (i32, i32) {
    %c0_i32 = arith.constant 0 : i32
    %c0_i32_0 = arith.constant 0 : i32
    return %arg0, %c0_i32 : i32, i32
  }
}

module attributes {stable_mosaic.version = 11 : i64} {
  func.func @_mlp_kernel(%arg0: i32, %arg1: memref<8x128xbf16, #tpu.memory_space<vmem>>, %arg2: memref<128x128xbf16, #tpu.memory_space<vmem>>, %arg3: memref<1x128xf32, #tpu.memory_space<vmem>>, %arg4: memref<128x128xbf16, #tpu.memory_space<vmem>>, %arg5: memref<1x128xf32, #tpu.memory_space<vmem>>, %arg6: memref<8x128xf32, #tpu.memory_space<vmem>>) attributes {dimension_semantics = [#tpu.dimension_semantics<parallel>], iteration_bounds = array<i64: 1>, scalar_prefetch = 0 : i64, scratch_operands = 0 : i64, tpu.core_type = #tpu.core_type<tc>, window_params = [{transform_indices = @transform_0, window_bounds = array<i64: 8, 128>}, {pipeline_mode = #tpu.pipeline_mode<synchronous>, transform_indices = @transform_1, window_bounds = array<i64: 128, 128>}, {pipeline_mode = #tpu.pipeline_mode<synchronous>, transform_indices = @transform_2, window_bounds = array<i64: 1, 128>}, {pipeline_mode = #tpu.pipeline_mode<synchronous>, transform_indices = @transform_3, window_bounds = array<i64: 128, 128>}, {pipeline_mode = #tpu.pipeline_mode<synchronous>, transform_indices = @transform_4, window_bounds = array<i64: 1, 128>}, {transform_indices = @transform_5, window_bounds = array<i64: 8, 128>}]} {
    %c0 = arith.constant 0 : index
    %c0_0 = arith.constant 0 : index
    %0 = vector.load %arg1[%c0, %c0_0] : memref<8x128xbf16, #tpu.memory_space<vmem>>, vector<8x128xbf16>
    %c0_1 = arith.constant 0 : index
    %c0_2 = arith.constant 0 : index
    %1 = vector.load %arg2[%c0_1, %c0_2] : memref<128x128xbf16, #tpu.memory_space<vmem>>, vector<128x128xbf16>
    %cst = arith.constant dense<0.000000e+00> : vector<8x128xf32>
    %2 = tpu.matmul %0, %1, %cst {dimension_numbers = #tpu.dot_dimension_numbers<[1], [0], [0], [1], [0, 0, 1, 1], [], []>} : vector<8x128xbf16>, vector<128x128xbf16>, vector<8x128xf32> -> vector<8x128xf32>
    %c0_3 = arith.constant 0 : index
    %c0_4 = arith.constant 0 : index
    %3 = vector.load %arg3[%c0_3, %c0_4] : memref<1x128xf32, #tpu.memory_space<vmem>>, vector<1x128xf32>
    %4 = vector.broadcast %3 : vector<1x128xf32> to vector<8x128xf32>
    %5 = arith.addf %2, %4 : vector<8x128xf32>
    %cst_5 = arith.constant 5.000000e-01 : f32
    %6 = vector.broadcast %cst_5 : f32 to vector<8x128xf32>
    %7 = arith.mulf %6, %5 : vector<8x128xf32>
    %cst_6 = arith.constant 0.707106769 : f32
    %8 = vector.broadcast %cst_6 : f32 to vector<8x128xf32>
    %9 = arith.mulf %5, %8 : vector<8x128xf32>
    %10 = math.erf %9 : vector<8x128xf32>
    %cst_7 = arith.constant 1.000000e+00 : f32
    %11 = vector.broadcast %cst_7 : f32 to vector<8x128xf32>
    %12 = arith.addf %11, %10 : vector<8x128xf32>
    %13 = arith.mulf %7, %12 : vector<8x128xf32>
    %14 = arith.truncf %13 : vector<8x128xf32> to vector<8x128xbf16>
    %c0_8 = arith.constant 0 : index
    %c0_9 = arith.constant 0 : index
    %15 = vector.load %arg4[%c0_8, %c0_9] : memref<128x128xbf16, #tpu.memory_space<vmem>>, vector<128x128xbf16>
    %cst_10 = arith.constant dense<0.000000e+00> : vector<8x128xf32>
    %16 = tpu.matmul %14, %15, %cst_10 {dimension_numbers = #tpu.dot_dimension_numbers<[1], [0], [0], [1], [0, 0, 1, 1], [], []>} : vector<8x128xbf16>, vector<128x128xbf16>, vector<8x128xf32> -> vector<8x128xf32>
    %c0_11 = arith.constant 0 : index
    %c0_12 = arith.constant 0 : index
    %17 = vector.load %arg5[%c0_11, %c0_12] : memref<1x128xf32, #tpu.memory_space<vmem>>, vector<1x128xf32>
    %18 = vector.broadcast %17 : vector<1x128xf32> to vector<8x128xf32>
    %19 = arith.addf %16, %18 : vector<8x128xf32>
    %c0_13 = arith.constant 0 : index
    %c0_14 = arith.constant 0 : index
    %20 = vector.load %arg6[%c0_13, %c0_14] : memref<8x128xf32, #tpu.memory_space<vmem>>, vector<8x128xf32>
    tpu.vector_store %arg6[%c0_13, %c0_14], %19 {strides = array<i32>} : memref<8x128xf32, #tpu.memory_space<vmem>>, vector<8x128xf32>,
    return
  }
  func.func @transform_0(%arg0: i32) -> (i32, i32) {
    %c0_i32 = arith.constant 0 : i32
    %c0_i32_0 = arith.constant 0 : i32
    return %arg0, %c0_i32 : i32, i32
  }
  func.func @transform_1(%arg0: i32) -> (i32, i32) {
    %c0_i32 = arith.constant 0 : i32
    %c0_i32_0 = arith.constant 0 : i32
    %c0_i32_1 = arith.constant 0 : i32
    return %c0_i32, %c0_i32_0 : i32, i32
  }
  func.func @transform_2(%arg0: i32) -> (i32, i32) {
    %c0_i32 = arith.constant 0 : i32
    %c0_i32_0 = arith.constant 0 : i32
    %c0_i32_1 = arith.constant 0 : i32
    return %c0_i32, %c0_i32_0 : i32, i32
  }
  func.func @transform_3(%arg0: i32) -> (i32, i32) {
    %c0_i32 = arith.constant 0 : i32
    %c0_i32_0 = arith.constant 0 : i32
    %c0_i32_1 = arith.constant 0 : i32
    return %c0_i32, %c0_i32_0 : i32, i32
  }
  func.func @transform_4(%arg0: i32) -> (i32, i32) {
    %c0_i32 = arith.constant 0 : i32
    %c0_i32_0 = arith.constant 0 : i32
    %c0_i32_1 = arith.constant 0 : i32
    return %c0_i32, %c0_i32_0 : i32, i32
  }
  func.func @transform_5(%arg0: i32) -> (i32, i32) {
    %c0_i32 = arith.constant 0 : i32
    %c0_i32_0 = arith.constant 0 : i32
    return %arg0, %c0_i32 : i32, i32
  }
}

</mosaic_0001>

<bundles_post_ra>
// kernel: tpu_custom_call.1
= control target key start
LH: loop header
LB: loop body
LE: loop exit
PB: predicated region body
PF: predicated region fallthrough
CT: control target
= control target key end

     0   :  { %10 = vsyncpa [#allocation3], 0  ;;  %s601_s0 = inlined_call_operand.hbm [shape: bf16[8,128], index: 0, kind: input, shape index: {}]   ;;  %s602_s1 = inlined_call_operand.hbm [shape: bf16[128,128], index: 1, kind: input, shape index: {}]   ;;  %s603_s2 = inlined_call_operand.vmem [shape: f32[1,128], index: 2, kind: input, shape index: {}]   ;;  %s604_s3 = inlined_call_operand.hbm [shape: bf16[128,128], index: 3, kind: input, shape index: {}]   ;;  %s605_s4 = inlined_call_operand.vmem [shape: f32[1,128], index: 4, kind: input, shape index: {}]   ;;  %s606_s5 = inlined_call_operand.hbm [shape: f32[8,128], index: 5, kind: output, shape index: {}]  }
   0x1   :  { %11 = vsyncpa [#allocation6], 0 }
   0x2   :  { %12 = vsyncpa [#allocation4], 0  ;;  %s503_s18 = smov [#allocation5]   ;;  %s409_s22 = scalar_lea.hbm %s602_s1, 1024 }
   0x3   :  { %s28_s19 = sshll.u32 %s503_s18, 4  ;;  %p410_p0 = scmp.ne.s32.totalorder %s602_s1, %s409_s22  ;;  %s29_s19 = int_to_ptr.vmem [resolvable:$true] %s28_s19 }
   0x4   :  { %p413_p1 = scmp.lt.u32.totalorder %s409_s22, %s602_s1 }
   0x6   :  { %p415_p2 = pnand %p413_p1, %p410_p0 }
   0x8   :  { %418 = shalt.err (!%p415_p2)
}
   0x9   :  { %s419_s27 = scalar_lea.vmem %s29_s19, 1024  ;;  %p424_p4 = scmp.lt.s32.totalorder %s29_s19, %s29_s19 }
   0xa   :  { %p420_p3 = scmp.ne.s32.totalorder %s29_s19, %s419_s27  ;;  %p425_p5 = scmp.lt.s32.totalorder %s419_s27, %s419_s27 }
   0xc   :  { %p426_p6 = por %p425_p5, %p424_p4 }
   0xe   :  { %p427_p7 = pnand %p426_p6, %p420_p3 }
  0x10   :  { %430 = shalt.err (!%p427_p7)
}
  0x11   :  { %s504_s28 = smov 64   ;;  %s505_s29 = smov 4  }
  0x12   :  { %34 = dma.hbm_to_vmem [thread:$0]  %s602_s1, 1024, %s29_s19, [#allocation6], %s504_s28, %s504_s28, %s505_s29  }
  0x13   :  { %s506_s7 = smov [#allocation2]   ;;  %s507_s9 = smov [#allocation7]  }
  0x14   :  { %s19_s8 = sshll.u32 %s506_s7, 4  ;;  %s42_s10 = sshll.u32 %s507_s9, 4  ;;  %s20_s8 = int_to_ptr.vmem [resolvable:$true] %s19_s8  ;;  %s43_s10 = int_to_ptr.vmem [resolvable:$true] %s42_s10 }
  0x15   :  { %s431_s13 = scalar_lea.hbm %s601_s0, 64 }
  0x16   :  { %p432_p8 = scmp.ne.s32.totalorder %s601_s0, %s431_s13  ;;  %p435_p9 = scmp.lt.u32.totalorder %s431_s13, %s601_s0 }
  0x18   :  { %p437_p10 = pnand %p435_p9, %p432_p8 }
  0x1a   :  { %440 = shalt.err (!%p437_p10)
}
  0x1b   :  { %s441_s1 = scalar_lea.vmem %s20_s8, 64  ;;  %p446_p12 = scmp.lt.s32.totalorder %s20_s8, %s20_s8 }
  0x1c   :  { %p442_p11 = scmp.ne.s32.totalorder %s20_s8, %s441_s1  ;;  %p447_p13 = scmp.lt.s32.totalorder %s441_s1, %s441_s1 }
  0x1e   :  { %p448_p0 = por %p447_p13, %p446_p12 }
  0x20   :  { %p449_p1 = pnand %p448_p0, %p442_p11 }
  0x22   :  { %452 = shalt.err (!%p449_p1)
}
  0x23   :  { %22 = dma.hbm_to_vmem [thread:$0]  %s601_s0, 64, %s20_s8, [#allocation3]  }
  0x24   :  { %s453_s22 = scalar_lea.hbm %s604_s3, 1024 }
  0x25   :  { %p454_p2 = scmp.ne.s32.totalorder %s604_s3, %s453_s22  ;;  %p457_p3 = scmp.lt.u32.totalorder %s453_s22, %s604_s3 }
  0x27   :  { %p459_p4 = pnand %p457_p3, %p454_p2 }
  0x29   :  { %462 = shalt.err (!%p459_p4)
}
  0x2a   :  { %s463_s27 = scalar_lea.vmem %s43_s10, 1024  ;;  %p468_p6 = scmp.lt.s32.totalorder %s43_s10, %s43_s10 }
  0x2b   :  { %p464_p5 = scmp.ne.s32.totalorder %s43_s10, %s463_s27  ;;  %p469_p7 = scmp.lt.s32.totalorder %s463_s27, %s463_s27 }
  0x2d   :  { %p470_p8 = por %p469_p7, %p468_p6 }
  0x2f   :  { %p471_p9 = pnand %p470_p8, %p464_p5 }
  0x31   :  { %474 = shalt.err (!%p471_p9)
}
  0x32   :  { %48 = dma.hbm_to_vmem [thread:$0]  %s604_s3, 1024, %s43_s10, [#allocation6], %s504_s28, %s504_s28, %s505_s29  }
  0x33   :  { %497 = dma.done.wait [#allocation3], 64  }
  0x34   :  { %498 = vsyncadd [#allocation3], 4294967232 }
  0x35   :  { %499 = dma.done.wait [#allocation6], 2048  }
  0x36   :  { %500 = vsyncadd [#allocation6], 4294965248  ;;  %v508_v0 = vmov 0.0   ;;  %vm509_vm0 = vmmov 0   ;;  %v391_v1 = vld [vmem:[#allocation5] sm:$0xff]   ;;  %v392_v2 = vld [vmem:[#allocation5 + $0x8] sm:$0xff]  }
  0x37   :  { %343 = vmatprep.subr.bf16.mxu0 %v508_v0  ;;  %359 = vmatprep.mubr.msk.bf16.mxu0 %vm509_vm0, %v508_v0  ;;  %v393_v3 = vld [vmem:[#allocation5 + $0x10] sm:$0xff]   ;;  %v399_v4 = vld [vmem:[#allocation7] sm:$0xff]   ;;  %v394_v5 = vld [vmem:[#allocation5 + $0x18] sm:$0xff]   ;;  %s510_s7 = smov [#allocation8]  }
  0x38   :  { %363 = vmatprep.subr.bf16.mxu1 %v508_v0  ;;  %379 = vmatprep.mubr.msk.bf16.mxu1 %vm509_vm0, %v508_v0  ;;  %v400_v6 = vld [vmem:[#allocation7 + $0x8] sm:$0xff]   ;;  %v395_v7 = vld [vmem:[#allocation5 + $0x20] sm:$0xff]   ;;  %v401_v8 = vld [vmem:[#allocation7 + $0x10] sm:$0xff]   ;;  %s297_s8 = sshll.u32 %s510_s7, 4  ;;  %s298_s8 = int_to_ptr.vmem [resolvable:$true] %s297_s8 }
  0x39   :  { %344 = vmatpush3.bf16.msra.mxu0 %v391_v1  ;;  %364 = vmatpush3.bf16.msra.mxu1 %v399_v4  ;;  %v396_v9 = vld [vmem:[#allocation5 + $0x28] sm:$0xff]   ;;  %v397_v10 = vld [vmem:[#allocation5 + $0x30] sm:$0xff]   ;;  %v398_v11 = vld [vmem:[#allocation5 + $0x38] sm:$0xff]   ;;  %p480_p11 = scmp.lt.s32.totalorder %s298_s8, %s298_s8 }
  0x3a   :  { %345 = vmatprep.subr.bf16.mxu0 %v508_v0  ;;  %365 = vmatprep.subr.bf16.mxu1 %v508_v0  ;;  %v61_v12 = vld [vmem:[#allocation2] sm:$0xf]  ;;  %v403_v14 = vld [vmem:[#allocation7 + $0x20] sm:$0xff]   ;;  %v404_v15 = vld [vmem:[#allocation7 + $0x28] sm:$0xff]  }
  0x3b   :  { %v402_v13 = vld [vmem:[#allocation7 + $0x18] sm:$0xff]   ;;  %v405_v16 = vld [vmem:[#allocation7 + $0x30] sm:$0xff]  }
  0x3c   :  { %v406_v17 = vld [vmem:[#allocation7 + $0x38] sm:$0xff]  }
  0x3d   :  { %346 = vmatpush3.bf16.msra.mxu0 %v392_v2  ;;  %366 = vmatpush3.bf16.msra.mxu1 %v400_v6  ;;  %v307_v18 = vld [vmem:[%s603_s2] ss:$0 sm:$0xff]  ;;  %s475_s2 = scalar_lea.vmem %s298_s8, 128 }
  0x3e   :  { %347 = vmatprep.subr.bf16.mxu0 %v508_v0  ;;  %367 = vmatprep.subr.bf16.mxu1 %v508_v0  ;;  %v316_v30 = vld [vmem:[%s605_s4] ss:$0 sm:$0xff]  ;;  %p476_p10 = scmp.ne.s32.totalorder %s298_s8, %s475_s2  ;;  %p481_p12 = scmp.lt.s32.totalorder %s475_s2, %s475_s2 }
  0x40   :  { %p482_p13 = por %p481_p12, %p480_p11 }
  0x41   :  { %348 = vmatpush3.bf16.msra.mxu0 %v393_v3  ;;  %368 = vmatpush3.bf16.msra.mxu1 %v401_v8 }
  0x42   :  { %349 = vmatprep.subr.bf16.mxu0 %v508_v0  ;;  %369 = vmatprep.subr.bf16.mxu1 %v508_v0  ;;  %p483_p0 = pnand %p482_p13, %p476_p10 }
  0x45   :  { %350 = vmatpush3.bf16.msra.mxu0 %v394_v5  ;;  %370 = vmatpush3.bf16.msra.mxu1 %v402_v13 }
  0x46   :  { %351 = vmatprep.subr.bf16.mxu0 %v508_v0  ;;  %371 = vmatprep.subr.bf16.mxu1 %v508_v0 }
  0x49   :  { %352 = vmatpush3.bf16.msra.mxu0 %v395_v7  ;;  %372 = vmatpush3.bf16.msra.mxu1 %v403_v14 }
  0x4a   :  { %353 = vmatprep.subr.bf16.mxu0 %v508_v0  ;;  %373 = vmatprep.subr.bf16.mxu1 %v508_v0 }
  0x4d   :  { %354 = vmatpush3.bf16.msra.mxu0 %v396_v9  ;;  %374 = vmatpush3.bf16.msra.mxu1 %v404_v15 }
  0x4e   :  { %355 = vmatprep.subr.bf16.mxu0 %v508_v0  ;;  %375 = vmatprep.subr.bf16.mxu1 %v508_v0 }
  0x51   :  { %356 = vmatpush3.bf16.msra.mxu0 %v397_v10  ;;  %376 = vmatpush3.bf16.msra.mxu1 %v405_v16 }
  0x52   :  { %357 = vmatprep.subr.bf16.mxu0 %v508_v0  ;;  %377 = vmatprep.subr.bf16.mxu1 %v508_v0 }
  0x55   :  { %358 = vmatpush3.bf16.msra.mxu0 %v398_v11  ;;  %378 = vmatpush3.bf16.msra.mxu1 %v406_v17 }
  0x58   :  { %360 = vmatmul.mubr.bf16.vlgmr.msra.gmra.mrb[0].mxu0 %v61_v12 }
 0x12b   :  { %v167_v19 = vpop.f32.mrb[0].mxu0 }
 0x12c   :  { %v168_v20 = vadd.f32 %v307_v18, %v167_v19  ;;  %v361_v21 = vpop.f32.mrb[1].mxu0 }
 0x12d   :  { %v170_v22 = vpop.f32.mrb[2].mxu0 }
 0x12e   :  { %v174_v23 = vmul.f32 0.70710677, %v168_v20  ;;  %v362_v24 = vpop.f32.mrb[3].mxu0  ;;  %v173_v26 = vmul.f32 0.5, %v168_v20 }
 0x130   :  { %407 = verf.f32 %v174_v23 }
 0x13a   :  { %v408_v25 = vpop.eup %407 }
 0x13b   :  { %v176_v27 = vadd.f32 1.0, %v408_v25 }
 0x13d   :  { %v177_v28 = vmul.f32 %v176_v27, %v173_v26 }
 0x13f   :  { %v178_v29 = vpack.c.bf16 %v177_v28, %v177_v28 }
 0x141   :  { %380 = vmatmul.mubr.bf16.vlgmr.msra.gmra.mrb[0].mxu1 %v178_v29 }
 0x214   :  { %v284_v31 = vpop.f32.mrb[0].mxu1 }
 0x215   :  { %v285_v32 = vadd.f32 %v316_v30, %v284_v31  ;;  %v381_v33 = vpop.f32.mrb[1].mxu1 }
 0x216   :  { %v287_v34 = vpop.f32.mrb[2].mxu1 }
 0x217   :  { %290 = vst [vmem:[#allocation8] sm:$0xff] %v285_v32  ;;  %v382_v35 = vpop.f32.mrb[3].mxu1 }
 0x218   :  { %486 = shalt.err (!%p483_p0)
}
 0x219   :  { %s487_s4 = scalar_lea.hbm %s606_s5, 128 }
 0x21a   :  { %p488_p1 = scmp.ne.s32.totalorder %s606_s5, %s487_s4  ;;  %p491_p2 = scmp.lt.u32.totalorder %s487_s4, %s606_s5 }
 0x21c   :  { %p493_p3 = pnand %p491_p2, %p488_p1 }
 0x21e   :  { %496 = shalt.err (!%p493_p3)
}
 0x21f   :  { %300 = dma.vmem_to_hbm [thread:$0]  %s298_s8, 128, %s606_s5, [#allocation4]  }
 0x220   :  { %501 = dma.done.wait [#allocation4], 128  }
 0x221   :  { %502 = vsyncadd [#allocation4], 4294967168 }
 0x222   :  { %304 = vsyncpa [#allocation3], 1 }
 0x223   :  { %305 = vsyncpa [#allocation6], 1 }
 0x224   :  { %306 = vsyncpa [#allocation4], 1 }

// kernel: tpu_custom_call.1
= control target key start
LH: loop header
LB: loop body
LE: loop exit
PB: predicated region body
PF: predicated region fallthrough
CT: control target
= control target key end

     0   :  { %10 = vsyncpa [#allocation3], 0  ;;  %s601_s0 = inlined_call_operand.hbm [shape: bf16[8,128], index: 0, kind: input, shape index: {}]   ;;  %s602_s1 = inlined_call_operand.hbm [shape: bf16[128,128], index: 1, kind: input, shape index: {}]   ;;  %s603_s2 = inlined_call_operand.vmem [shape: f32[1,128], index: 2, kind: input, shape index: {}]   ;;  %s604_s3 = inlined_call_operand.hbm [shape: bf16[128,128], index: 3, kind: input, shape index: {}]   ;;  %s605_s4 = inlined_call_operand.vmem [shape: f32[1,128], index: 4, kind: input, shape index: {}]   ;;  %s606_s5 = inlined_call_operand.hbm [shape: f32[8,128], index: 5, kind: output, shape index: {}]  }
   0x1   :  { %11 = vsyncpa [#allocation6], 0 }
   0x2   :  { %12 = vsyncpa [#allocation4], 0  ;;  %s503_s18 = smov [#allocation5]   ;;  %s409_s22 = scalar_lea.hbm %s602_s1, 1024 }
   0x3   :  { %s28_s19 = sshll.u32 %s503_s18, 4  ;;  %p410_p0 = scmp.ne.s32.totalorder %s602_s1, %s409_s22  ;;  %s29_s19 = int_to_ptr.vmem [resolvable:$true] %s28_s19 }
   0x4   :  { %p413_p1 = scmp.lt.u32.totalorder %s409_s22, %s602_s1 }
   0x6   :  { %p415_p2 = pnand %p413_p1, %p410_p0 }
   0x8   :  { %418 = shalt.err (!%p415_p2)
}
   0x9   :  { %s419_s27 = scalar_lea.vmem %s29_s19, 1024  ;;  %p424_p4 = scmp.lt.s32.totalorder %s29_s19, %s29_s19 }
   0xa   :  { %p420_p3 = scmp.ne.s32.totalorder %s29_s19, %s419_s27  ;;  %p425_p5 = scmp.lt.s32.totalorder %s419_s27, %s419_s27 }
   0xc   :  { %p426_p6 = por %p425_p5, %p424_p4 }
   0xe   :  { %p427_p7 = pnand %p426_p6, %p420_p3 }
  0x10   :  { %430 = shalt.err (!%p427_p7)
}
  0x11   :  { %s504_s28 = smov 64   ;;  %s505_s29 = smov 4  }
  0x12   :  { %34 = dma.hbm_to_vmem [thread:$0]  %s602_s1, 1024, %s29_s19, [#allocation6], %s504_s28, %s504_s28, %s505_s29  }
  0x13   :  { %s506_s7 = smov [#allocation2]   ;;  %s507_s9 = smov [#allocation7]  }
  0x14   :  { %s19_s8 = sshll.u32 %s506_s7, 4  ;;  %s42_s10 = sshll.u32 %s507_s9, 4  ;;  %s20_s8 = int_to_ptr.vmem [resolvable:$true] %s19_s8  ;;  %s43_s10 = int_to_ptr.vmem [resolvable:$true] %s42_s10 }
  0x15   :  { %s431_s13 = scalar_lea.hbm %s601_s0, 64 }
  0x16   :  { %p432_p8 = scmp.ne.s32.totalorder %s601_s0, %s431_s13  ;;  %p435_p9 = scmp.lt.u32.totalorder %s431_s13, %s601_s0 }
  0x18   :  { %p437_p10 = pnand %p435_p9, %p432_p8 }
  0x1a   :  { %440 = shalt.err (!%p437_p10)
}
  0x1b   :  { %s441_s1 = scalar_lea.vmem %s20_s8, 64  ;;  %p446_p12 = scmp.lt.s32.totalorder %s20_s8, %s20_s8 }
  0x1c   :  { %p442_p11 = scmp.ne.s32.totalorder %s20_s8, %s441_s1  ;;  %p447_p13 = scmp.lt.s32.totalorder %s441_s1, %s441_s1 }
  0x1e   :  { %p448_p0 = por %p447_p13, %p446_p12 }
  0x20   :  { %p449_p1 = pnand %p448_p0, %p442_p11 }
  0x22   :  { %452 = shalt.err (!%p449_p1)
}
  0x23   :  { %22 = dma.hbm_to_vmem [thread:$0]  %s601_s0, 64, %s20_s8, [#allocation3]  }
  0x24   :  { %s453_s22 = scalar_lea.hbm %s604_s3, 1024 }
  0x25   :  { %p454_p2 = scmp.ne.s32.totalorder %s604_s3, %s453_s22  ;;  %p457_p3 = scmp.lt.u32.totalorder %s453_s22, %s604_s3 }
  0x27   :  { %p459_p4 = pnand %p457_p3, %p454_p2 }
  0x29   :  { %462 = shalt.err (!%p459_p4)
}
  0x2a   :  { %s463_s27 = scalar_lea.vmem %s43_s10, 1024  ;;  %p468_p6 = scmp.lt.s32.totalorder %s43_s10, %s43_s10 }
  0x2b   :  { %p464_p5 = scmp.ne.s32.totalorder %s43_s10, %s463_s27  ;;  %p469_p7 = scmp.lt.s32.totalorder %s463_s27, %s463_s27 }
  0x2d   :  { %p470_p8 = por %p469_p7, %p468_p6 }
  0x2f   :  { %p471_p9 = pnand %p470_p8, %p464_p5 }
  0x31   :  { %474 = shalt.err (!%p471_p9)
}
  0x32   :  { %48 = dma.hbm_to_vmem [thread:$0]  %s604_s3, 1024, %s43_s10, [#allocation6], %s504_s28, %s504_s28, %s505_s29  }
  0x33   :  { %497 = dma.done.wait [#allocation3], 64  }
  0x34   :  { %498 = vsyncadd [#allocation3], 4294967232 }
  0x35   :  { %499 = dma.done.wait [#allocation6], 2048  }
  0x36   :  { %500 = vsyncadd [#allocation6], 4294965248  ;;  %v508_v0 = vmov 0.0   ;;  %vm509_vm0 = vmmov 0   ;;  %v391_v1 = vld [vmem:[#allocation5] sm:$0xff]   ;;  %v392_v2 = vld [vmem:[#allocation5 + $0x8] sm:$0xff]  }
  0x37   :  { %343 = vmatprep.subr.bf16.mxu0 %v508_v0  ;;  %359 = vmatprep.mubr.msk.bf16.mxu0 %vm509_vm0, %v508_v0  ;;  %v393_v3 = vld [vmem:[#allocation5 + $0x10] sm:$0xff]   ;;  %v399_v4 = vld [vmem:[#allocation7] sm:$0xff]   ;;  %v394_v5 = vld [vmem:[#allocation5 + $0x18] sm:$0xff]   ;;  %s510_s7 = smov [#allocation8]  }
  0x38   :  { %363 = vmatprep.subr.bf16.mxu1 %v508_v0  ;;  %379 = vmatprep.mubr.msk.bf16.mxu1 %vm509_vm0, %v508_v0  ;;  %v400_v6 = vld [vmem:[#allocation7 + $0x8] sm:$0xff]   ;;  %v395_v7 = vld [vmem:[#allocation5 + $0x20] sm:$0xff]   ;;  %v401_v8 = vld [vmem:[#allocation7 + $0x10] sm:$0xff]   ;;  %s297_s8 = sshll.u32 %s510_s7, 4  ;;  %s298_s8 = int_to_ptr.vmem [resolvable:$true] %s297_s8 }
  0x39   :  { %344 = vmatpush3.bf16.msra.mxu0 %v391_v1  ;;  %364 = vmatpush3.bf16.msra.mxu1 %v399_v4  ;;  %v396_v9 = vld [vmem:[#allocation5 + $0x28] sm:$0xff]   ;;  %v397_v10 = vld [vmem:[#allocation5 + $0x30] sm:$0xff]   ;;  %v398_v11 = vld [vmem:[#allocation5 + $0x38] sm:$0xff]   ;;  %p480_p11 = scmp.lt.s32.totalorder %s298_s8, %s298_s8 }
  0x3a   :  { %345 = vmatprep.subr.bf16.mxu0 %v508_v0  ;;  %365 = vmatprep.subr.bf16.mxu1 %v508_v0  ;;  %v61_v12 = vld [vmem:[#allocation2] sm:$0xf]  ;;  %v403_v14 = vld [vmem:[#allocation7 + $0x20] sm:$0xff]   ;;  %v404_v15 = vld [vmem:[#allocation7 + $0x28] sm:$0xff]  }
  0x3b   :  { %v402_v13 = vld [vmem:[#allocation7 + $0x18] sm:$0xff]   ;;  %v405_v16 = vld [vmem:[#allocation7 + $0x30] sm:$0xff]  }
  0x3c   :  { %v406_v17 = vld [vmem:[#allocation7 + $0x38] sm:$0xff]  }
  0x3d   :  { %346 = vmatpush3.bf16.msra.mxu0 %v392_v2  ;;  %366 = vmatpush3.bf16.msra.mxu1 %v400_v6  ;;  %v307_v18 = vld [vmem:[%s603_s2] ss:$0 sm:$0xff]  ;;  %s475_s2 = scalar_lea.vmem %s298_s8, 128 }
  0x3e   :  { %347 = vmatprep.subr.bf16.mxu0 %v508_v0  ;;  %367 = vmatprep.subr.bf16.mxu1 %v508_v0  ;;  %v316_v30 = vld [vmem:[%s605_s4] ss:$0 sm:$0xff]  ;;  %p476_p10 = scmp.ne.s32.totalorder %s298_s8, %s475_s2  ;;  %p481_p12 = scmp.lt.s32.totalorder %s475_s2, %s475_s2 }
  0x40   :  { %p482_p13 = por %p481_p12, %p480_p11 }
  0x41   :  { %348 = vmatpush3.bf16.msra.mxu0 %v393_v3  ;;  %368 = vmatpush3.bf16.msra.mxu1 %v401_v8 }
  0x42   :  { %349 = vmatprep.subr.bf16.mxu0 %v508_v0  ;;  %369 = vmatprep.subr.bf16.mxu1 %v508_v0  ;;  %p483_p0 = pnand %p482_p13, %p476_p10 }
  0x45   :  { %350 = vmatpush3.bf16.msra.mxu0 %v394_v5  ;;  %370 = vmatpush3.bf16.msra.mxu1 %v402_v13 }
  0x46   :  { %351 = vmatprep.subr.bf16.mxu0 %v508_v0  ;;  %371 = vmatprep.subr.bf16.mxu1 %v508_v0 }
  0x49   :  { %352 = vmatpush3.bf16.msra.mxu0 %v395_v7  ;;  %372 = vmatpush3.bf16.msra.mxu1 %v403_v14 }
  0x4a   :  { %353 = vmatprep.subr.bf16.mxu0 %v508_v0  ;;  %373 = vmatprep.subr.bf16.mxu1 %v508_v0 }
  0x4d   :  { %354 = vmatpush3.bf16.msra.mxu0 %v396_v9  ;;  %374 = vmatpush3.bf16.msra.mxu1 %v404_v15 }
  0x4e   :  { %355 = vmatprep.subr.bf16.mxu0 %v508_v0  ;;  %375 = vmatprep.subr.bf16.mxu1 %v508_v0 }
  0x51   :  { %356 = vmatpush3.bf16.msra.mxu0 %v397_v10  ;;  %376 = vmatpush3.bf16.msra.mxu1 %v405_v16 }
  0x52   :  { %357 = vmatprep.subr.bf16.mxu0 %v508_v0  ;;  %377 = vmatprep.subr.bf16.mxu1 %v508_v0 }
  0x55   :  { %358 = vmatpush3.bf16.msra.mxu0 %v398_v11  ;;  %378 = vmatpush3.bf16.msra.mxu1 %v406_v17 }
  0x58   :  { %360 = vmatmul.mubr.bf16.vlgmr.msra.gmra.mrb[0].mxu0 %v61_v12 }
 0x12b   :  { %v167_v19 = vpop.f32.mrb[0].mxu0 }
 0x12c   :  { %v168_v20 = vadd.f32 %v307_v18, %v167_v19  ;;  %v361_v21 = vpop.f32.mrb[1].mxu0 }
 0x12d   :  { %v170_v22 = vpop.f32.mrb[2].mxu0 }
 0x12e   :  { %v174_v23 = vmul.f32 0.70710677, %v168_v20  ;;  %v362_v24 = vpop.f32.mrb[3].mxu0  ;;  %v173_v26 = vmul.f32 0.5, %v168_v20 }
 0x130   :  { %407 = verf.f32 %v174_v23 }
 0x13a   :  { %v408_v25 = vpop.eup %407 }
 0x13b   :  { %v176_v27 = vadd.f32 1.0, %v408_v25 }
 0x13d   :  { %v177_v28 = vmul.f32 %v176_v27, %v173_v26 }
 0x13f   :  { %v178_v29 = vpack.c.bf16 %v177_v28, %v177_v28 }
 0x141   :  { %380 = vmatmul.mubr.bf16.vlgmr.msra.gmra.mrb[0].mxu1 %v178_v29 }
 0x214   :  { %v284_v31 = vpop.f32.mrb[0].mxu1 }
 0x215   :  { %v285_v32 = vadd.f32 %v316_v30, %v284_v31  ;;  %v381_v33 = vpop.f32.mrb[1].mxu1 }
 0x216   :  { %v287_v34 = vpop.f32.mrb[2].mxu1 }
 0x217   :  { %290 = vst [vmem:[#allocation8] sm:$0xff] %v285_v32  ;;  %v382_v35 = vpop.f32.mrb[3].mxu1 }
 0x218   :  { %486 = shalt.err (!%p483_p0)
}
 0x219   :  { %s487_s4 = scalar_lea.hbm %s606_s5, 128 }
 0x21a   :  { %p488_p1 = scmp.ne.s32.totalorder %s606_s5, %s487_s4  ;;  %p491_p2 = scmp.lt.u32.totalorder %s487_s4, %s606_s5 }
 0x21c   :  { %p493_p3 = pnand %p491_p2, %p488_p1 }
 0x21e   :  { %496 = shalt.err (!%p493_p3)
}
 0x21f   :  { %300 = dma.vmem_to_hbm [thread:$0]  %s298_s8, 128, %s606_s5, [#allocation4]  }
 0x220   :  { %501 = dma.done.wait [#allocation4], 128  }
 0x221   :  { %502 = vsyncadd [#allocation4], 4294967168 }
 0x222   :  { %304 = vsyncpa [#allocation3], 1 }
 0x223   :  { %305 = vsyncpa [#allocation6], 1 }
 0x224   :  { %306 = vsyncpa [#allocation4], 1 }

</bundles_post_ra>
